<compile_context>
chip_gen: v7x
topology: tpu7x:2x2x1
jax: 0.10.0
libtpu: 0.0.40
codegen_flags: <defaults>
</compile_context>

<pallas_src>
import jax
import jax.numpy as jnp
from jax.experimental import pallas as pl
from jax.experimental.pallas import tpu as pltpu


# ---------------------------------------------------------------------------
# Pallas kernels
# ---------------------------------------------------------------------------
def _gcn_first_kernel(a_ref, x_ref, w1_ref, b1_ref, w2_ref, o_ref, acc_ref):
    """GCN layer 1 (+ fused pre-transform for layer 2), tiled over A_hat."""
    k = pl.program_id(1)

    @pl.when(k == 0)
    def _():
        acc_ref[...] = jnp.zeros_like(acc_ref)

    # Feature transform for this k-tile: (TK, C_in) @ (C_in, HID), bf16 -> f32.
    t = jnp.dot(x_ref[...], w1_ref[...], preferred_element_type=jnp.float32)
    # Aggregation: (TM, TK) @ (TK, HID), bf16 operands, f32 accumulation.
    acc_ref[...] += jnp.dot(a_ref[...], t.astype(jnp.bfloat16),
                            preferred_element_type=jnp.float32)

    @pl.when(k == pl.num_programs(1) - 1)
    def _():
        h = jnp.maximum(acc_ref[...] + b1_ref[...], 0.0)        # bias + ReLU, f32
        # Fused next-layer transform: (TM, HID) @ (HID, HID).
        o_ref[...] = jnp.dot(h.astype(jnp.bfloat16), w2_ref[...],
                             preferred_element_type=jnp.float32).astype(o_ref.dtype)


def _gcn_mid_kernel(a_ref, t_ref, b_ref, wn_ref, o_ref, acc_ref):
    """GCN layer on pre-transformed features (+ fused next-layer transform)."""
    k = pl.program_id(1)

    @pl.when(k == 0)
    def _():
        acc_ref[...] = jnp.zeros_like(acc_ref)

    acc_ref[...] += jnp.dot(a_ref[...], t_ref[...],
                            preferred_element_type=jnp.float32)

    @pl.when(k == pl.num_programs(1) - 1)
    def _():
        h = jnp.maximum(acc_ref[...] + b_ref[...], 0.0)
        o_ref[...] = jnp.dot(h.astype(jnp.bfloat16), wn_ref[...],
                             preferred_element_type=jnp.float32).astype(o_ref.dtype)


def _gcn_final_kernel(a_ref, t_ref, pool_ref, b3_ref, wl_ref, bl_ref,
                      o_ref, tmp_ref, g_ref):
    """Fused GCN layer 3 + global_mean_pool + Linear, 2-D tiled over A_hat."""
    i = pl.program_id(0)
    k = pl.program_id(1)
    ni = pl.num_programs(0)
    nk = pl.num_programs(1)

    @pl.when(jnp.logical_and(i == 0, k == 0))
    def _():
        g_ref[...] = jnp.zeros_like(g_ref)

    @pl.when(k == 0)
    def _():
        tmp_ref[...] = jnp.zeros_like(tmp_ref)

    # (TM, HID) += (TM, TK) @ (TK, HID), bf16 operands, f32 accumulation.
    tmp_ref[...] += jnp.dot(a_ref[...], t_ref[...],
                            preferred_element_type=jnp.float32)

    @pl.when(k == nk - 1)
    def _():
        # Pool contribution of this row tile: (G, TM) @ (TM, HID), f32.
        g_ref[...] += jnp.dot(pool_ref[...], tmp_ref[...],
                              preferred_element_type=jnp.float32)

    @pl.when(jnp.logical_and(i == ni - 1, k == nk - 1))
    def _():
        # pool rows sum to 1, so adding b3 after pooling is exact.
        g = g_ref[...] + b3_ref[...]
        o_ref[...] = (jnp.dot(g, wl_ref[...], preferred_element_type=jnp.float32)
                      + bl_ref[...]).astype(o_ref.dtype)


# ---------------------------------------------------------------------------
# pallas_call wrappers
# ---------------------------------------------------------------------------
_TILE = 512  # A_hat tile edge when N is large (multiple of 8 and 128)


def _gcn_first(a, x, w1, b1, w2, tm, tk):
    n_pad = a.shape[0]
    c_in = x.shape[1]
    h1 = w1.shape[1]
    h2 = w2.shape[1]
    grid = (n_pad // tm, n_pad // tk)
    return pl.pallas_call(
        _gcn_first_kernel,
        out_shape=jax.ShapeDtypeStruct((n_pad, h2), jnp.bfloat16),
        grid_spec=pltpu.PrefetchScalarGridSpec(
            num_scalar_prefetch=0,
            grid=grid,
            in_specs=[
                pl.BlockSpec((tm, tk), lambda i, k: (i, k)),     # A_hat tile
                pl.BlockSpec((tk, c_in), lambda i, k: (k, 0)),   # raw features
                pl.BlockSpec((c_in, h1), lambda i, k: (0, 0)),   # W1 (resident)
                pl.BlockSpec((1, h1), lambda i, k: (0, 0)),      # b1
                pl.BlockSpec((h1, h2), lambda i, k: (0, 0)),     # W2 (resident)
            ],
            out_specs=pl.BlockSpec((tm, h2), lambda i, k: (i, 0)),
            scratch_shapes=[pltpu.VMEM((tm, h1), jnp.float32)],
        ),
        compiler_params=pltpu.CompilerParams(
            dimension_semantics=("parallel", "arbitrary")),
    )(a, x, w1, b1, w2)


def _gcn_mid(a, t, b, wn, tm, tk):
    n_pad = a.shape[0]
    hid = t.shape[1]
    h_next = wn.shape[1]
    grid = (n_pad // tm, n_pad // tk)
    return pl.pallas_call(
        _gcn_mid_kernel,
        out_shape=jax.ShapeDtypeStruct((n_pad, h_next), jnp.bfloat16),
        grid_spec=pltpu.PrefetchScalarGridSpec(
            num_scalar_prefetch=0,
            grid=grid,
            in_specs=[
                pl.BlockSpec((tm, tk), lambda i, k: (i, k)),     # A_hat tile
                pl.BlockSpec((tk, hid), lambda i, k: (k, 0)),    # pre-transformed
                pl.BlockSpec((1, hid), lambda i, k: (0, 0)),     # bias
                pl.BlockSpec((hid, h_next), lambda i, k: (0, 0)),  # W_next
            ],
            out_specs=pl.BlockSpec((tm, h_next), lambda i, k: (i, 0)),
            scratch_shapes=[pltpu.VMEM((tm, hid), jnp.float32)],
        ),
        compiler_params=pltpu.CompilerParams(
            dimension_semantics=("parallel", "arbitrary")),
    )(a, t, b, wn)


def _gcn_final(a, t3, pool, b3, wl, bl, tm, tk):
    n_pad = a.shape[0]
    num_graphs = pool.shape[0]
    hid = t3.shape[1]
    c_out = wl.shape[1]
    grid = (n_pad // tm, n_pad // tk)
    return pl.pallas_call(
        _gcn_final_kernel,
        out_shape=jax.ShapeDtypeStruct((num_graphs, c_out), jnp.float32),
        grid_spec=pltpu.PrefetchScalarGridSpec(
            num_scalar_prefetch=0,
            grid=grid,
            in_specs=[
                pl.BlockSpec((tm, tk), lambda i, k: (i, k)),          # A_hat tile
                pl.BlockSpec((tk, hid), lambda i, k: (k, 0)),         # t3 tile
                pl.BlockSpec((num_graphs, tm), lambda i, k: (0, i)),  # pool cols
                pl.BlockSpec((1, hid), lambda i, k: (0, 0)),          # b3
                pl.BlockSpec((hid, c_out), lambda i, k: (0, 0)),      # W_lin
                pl.BlockSpec((1, c_out), lambda i, k: (0, 0)),        # b_lin
            ],
            out_specs=pl.BlockSpec((num_graphs, c_out), lambda i, k: (0, 0)),
            scratch_shapes=[pltpu.VMEM((tm, hid), jnp.float32),
                            pltpu.VMEM((num_graphs, hid), jnp.float32)],
        ),
        compiler_params=pltpu.CompilerParams(
            dimension_semantics=("arbitrary", "arbitrary")),
    )(a, t3, pool, b3, wl, bl)


def _round_up(n, m):
    return ((n + m - 1) // m) * m


def _pad2(x, rows, cols):
    pr, pc = rows - x.shape[0], cols - x.shape[1]
    if pr == 0 and pc == 0:
        return x
    return jnp.pad(x, ((0, pr), (0, pc)))


def graph_gcn_forward(a_hat, x, params, pool, *, tile=_TILE):
    n = x.shape[0]
    num_graphs = pool.shape[0]

    if n <= tile:
        n_pad = n
        tm = tk = n
    else:
        n_pad = _round_up(n, tile)
        tm = tk = tile

    # bf16 operands for all large matmuls (f32 accumulation inside the kernels).
    # Zero padding is exact: padded nodes have zero A_hat rows/cols, zero
    # features and zero pool weight, so they never contribute to the output.
    a_b = _pad2(a_hat, n_pad, n_pad).astype(jnp.bfloat16)
    x_b = _pad2(x, n_pad, x.shape[1]).astype(jnp.bfloat16)
    pool_p = _pad2(pool, num_graphs, n_pad).astype(jnp.float32)

    w1 = params["w1"].astype(jnp.bfloat16)
    w2 = params["w2"].astype(jnp.bfloat16)
    w3 = params["w3"].astype(jnp.bfloat16)

    # t2 = relu(A @ (x @ W1) + b1) @ W2
    t2 = _gcn_first(a_b, x_b, w1, params["b1"], w2, tm, tk)
    # t3 = relu(A @ t2 + b2) @ W3
    t3 = _gcn_mid(a_b, t2, params["b2"], w3, tm, tk)
    # out = (pool @ (A @ t3) + b3) @ W_lin + b_lin
    return _gcn_final(a_b, t3, pool_p, params["b3"],
                      params["w_lin"], params["b_lin"], tm, tk)


# ---------------------------------------------------------------------------
# Plain-JAX glue: dense normalized adjacency, mean-pool matrix, reference.
# ---------------------------------------------------------------------------
def build_normalized_adj(edge_index, num_nodes):
    # GCNConv semantics: add self-loops, symmetric normalization
    # A_hat[i, j] = deg[i]^-1/2 * A[i, j] * deg[j]^-1/2  (edge j -> i).
    row, col = edge_index[0], edge_index[1]          # source, target
    adj = jnp.zeros((num_nodes, num_nodes), jnp.float32)
    adj = adj.at[col, row].add(1.0)
    adj = adj + jnp.eye(num_nodes, dtype=jnp.float32)  # self-loops
    deg = adj.sum(axis=1)
    d_inv_sqrt = jnp.where(deg > 0, 1.0 / jnp.sqrt(deg), 0.0)
    return d_inv_sqrt[:, None] * adj * d_inv_sqrt[None, :]


def build_mean_pool(batch, num_graphs):
    onehot = (batch[None, :] == jnp.arange(num_graphs)[:, None]).astype(jnp.float32)
    counts = onehot.sum(axis=1, keepdims=True)
    return onehot / jnp.maximum(counts, 1.0)


def reference_forward(a_hat, x, params, pool):
    h = jnp.maximum(a_hat @ (x @ params["w1"]) + params["b1"], 0.0)
    h = jnp.maximum(a_hat @ (h @ params["w2"]) + params["b2"], 0.0)
    h = a_hat @ (h @ params["w3"]) + params["b3"]
    g = pool @ h
    return g @ params["w_lin"] + params["b_lin"]


if __name__ == "__main__":
    # Small, deterministic problem: 2 graphs of 8 nodes each.
    N = 16                 # total nodes
    C_IN = 8               # in_channels
    HID = 32               # hidden_channels
    C_OUT = 4              # out_channels
    G = 2                  # number of graphs in the batch

    key = jax.random.PRNGKey(0)
    k = jax.random.split(key, 10)

    # Node features.
    x = jax.random.normal(k[0], (N, C_IN), dtype=jnp.float32)

    # Edge index: a directed ring (both directions) inside each 8-node graph.
    src, dst = [], []
    for g in range(G):
        base = g * 8
        for i in range(8):
            a, b = base + i, base + (i + 1) % 8
            src += [a, b]
            dst += [b, a]
    edge_index = jnp.array([src, dst], dtype=jnp.int32)
    edge_attr = jax.random.normal(k[1], (edge_index.shape[1], 1), jnp.float32)
    # edge_attr is unused — torch_geometric's GCN (supports_edge_attr=False)
    # silently drops it when only edge_attr is supplied.
    del edge_attr

    batch = jnp.repeat(jnp.arange(G, dtype=jnp.int32), 8)

    # Deterministic parameter init (shapes from GraphGCN.__init__):
    #   GCNConv(C_IN->HID), GCNConv(HID->HID), GCNConv(HID->HID), Linear(HID->C_OUT)
    params = {
        "w1": 0.1 * jax.random.normal(k[2], (C_IN, HID), jnp.float32),
        "b1": 0.1 * jax.random.normal(k[3], (1, HID), jnp.float32),
        "w2": 0.1 * jax.random.normal(k[4], (HID, HID), jnp.float32),
        "b2": 0.1 * jax.random.normal(k[5], (1, HID), jnp.float32),
        "w3": 0.1 * jax.random.normal(k[6], (HID, HID), jnp.float32),
        "b3": 0.1 * jax.random.normal(k[7], (1, HID), jnp.float32),
        "w_lin": 0.1 * jax.random.normal(k[8], (HID, C_OUT), jnp.float32),
        "b_lin": 0.1 * jax.random.normal(k[9], (1, C_OUT), jnp.float32),
    }

    a_hat = build_normalized_adj(edge_index, N)
    pool = build_mean_pool(batch, G)

    out = graph_gcn_forward(a_hat, x, params, pool)
    out = jax.block_until_ready(out)

    ref = reference_forward(a_hat, x, params, pool)
    assert out.shape == (G, C_OUT)
    # bf16 matmul operands (f32 accumulation) -> loosened tolerance vs f32 ref.
    max_err = float(jnp.max(jnp.abs(out - ref)))
    assert max_err < 3e-2, f"mismatch vs reference: max abs err {max_err}"

    print("KERNEL_OK")
</pallas_src>

<mosaic_0001>
module attributes {stable_mosaic.version = 11 : i64} {
  func.func @_gcn_first_kernel(%arg0: i32, %arg1: i32, %arg2: memref<16x16xbf16, #tpu.memory_space<vmem>>, %arg3: memref<16x8xbf16, #tpu.memory_space<vmem>>, %arg4: memref<8x32xbf16, #tpu.memory_space<vmem>>, %arg5: memref<1x32xf32, #tpu.memory_space<vmem>>, %arg6: memref<32x32xbf16, #tpu.memory_space<vmem>>, %arg7: memref<16x32xbf16, #tpu.memory_space<vmem>>, %arg8: memref<16x32xf32, #tpu.memory_space<vmem>>) attributes {dimension_semantics = [#tpu.dimension_semantics<parallel>, #tpu.dimension_semantics<arbitrary>], iteration_bounds = array<i64: 1, 1>, scalar_prefetch = 0 : i64, scratch_operands = 1 : i64, tpu.core_type = #tpu.core_type<tc>, window_params = [{transform_indices = @transform_0, window_bounds = array<i64: 16, 16>}, {transform_indices = @transform_1, window_bounds = array<i64: 16, 8>}, {pipeline_mode = #tpu.pipeline_mode<synchronous>, transform_indices = @transform_2, window_bounds = array<i64: 8, 32>}, {pipeline_mode = #tpu.pipeline_mode<synchronous>, transform_indices = @transform_3, window_bounds = array<i64: 1, 32>}, {pipeline_mode = #tpu.pipeline_mode<synchronous>, transform_indices = @transform_4, window_bounds = array<i64: 32, 32>}, {transform_indices = @transform_5, window_bounds = array<i64: 16, 32>}]} {
    %c0_i32 = arith.constant 0 : i32
    %0 = arith.cmpi eq, %arg1, %c0_i32 : i32
    %1 = arith.extui %0 : i1 to i32
    %c0_i32_0 = arith.constant 0 : i32
    %2 = arith.cmpi ne, %1, %c0_i32_0 : i32
    scf.if %2 {
      %cst_13 = arith.constant 0.000000e+00 : f32
      %15 = vector.broadcast %cst_13 : f32 to vector<16x32xf32>
      %c0_14 = arith.constant 0 : index
      %c0_15 = arith.constant 0 : index
      %16 = vector.load %arg8[%c0_14, %c0_15] : memref<16x32xf32, #tpu.memory_space<vmem>>, vector<16x32xf32>
      tpu.vector_store %arg8[%c0_14, %c0_15], %15 {strides = array<i32>} : memref<16x32xf32, #tpu.memory_space<vmem>>, vector<16x32xf32>,
    } else {
    }
    %c0 = arith.constant 0 : index
    %c0_1 = arith.constant 0 : index
    %3 = vector.load %arg3[%c0, %c0_1] : memref<16x8xbf16, #tpu.memory_space<vmem>>, vector<16x8xbf16>
    %c0_2 = arith.constant 0 : index
    %c0_3 = arith.constant 0 : index
    %4 = vector.load %arg4[%c0_2, %c0_3] : memref<8x32xbf16, #tpu.memory_space<vmem>>, vector<8x32xbf16>
    %cst = arith.constant dense<0.000000e+00> : vector<16x32xf32>
    %5 = tpu.matmul %3, %4, %cst {dimension_numbers = #tpu.dot_dimension_numbers<[1], [0], [0], [1], [0, 0, 1, 1], [], []>} : vector<16x8xbf16>, vector<8x32xbf16>, vector<16x32xf32> -> vector<16x32xf32>
    %c0_4 = arith.constant 0 : index
    %c0_5 = arith.constant 0 : index
    %6 = vector.load %arg8[%c0_4, %c0_5] : memref<16x32xf32, #tpu.memory_space<vmem>>, vector<16x32xf32>
    %c0_6 = arith.constant 0 : index
    %c0_7 = arith.constant 0 : index
    %7 = vector.load %arg2[%c0_6, %c0_7] : memref<16x16xbf16, #tpu.memory_space<vmem>>, vector<16x16xbf16>
    %8 = arith.truncf %5 : vector<16x32xf32> to vector<16x32xbf16>
    %cst_8 = arith.constant dense<0.000000e+00> : vector<16x32xf32>
    %9 = tpu.matmul %7, %8, %cst_8 {dimension_numbers = #tpu.dot_dimension_numbers<[1], [0], [0], [1], [0, 0, 1, 1], [], []>} : vector<16x16xbf16>, vector<16x32xbf16>, vector<16x32xf32> -> vector<16x32xf32>
    %10 = arith.addf %6, %9 : vector<16x32xf32>
    %c0_9 = arith.constant 0 : index
    %c0_10 = arith.constant 0 : index
    %11 = vector.load %arg8[%c0_9, %c0_10] : memref<16x32xf32, #tpu.memory_space<vmem>>, vector<16x32xf32>
    tpu.vector_store %arg8[%c0_9, %c0_10], %10 {strides = array<i32>} : memref<16x32xf32, #tpu.memory_space<vmem>>, vector<16x32xf32>,
    %c0_i32_11 = arith.constant 0 : i32
    %12 = arith.cmpi eq, %arg1, %c0_i32_11 : i32
    %13 = arith.extui %12 : i1 to i32
    %c0_i32_12 = arith.constant 0 : i32
    %14 = arith.cmpi ne, %13, %c0_i32_12 : i32
    scf.if %14 {
      %c0_13 = arith.constant 0 : index
      %c0_14 = arith.constant 0 : index
      %15 = vector.load %arg8[%c0_13, %c0_14] : memref<16x32xf32, #tpu.memory_space<vmem>>, vector<16x32xf32>
      %c0_15 = arith.constant 0 : index
      %c0_16 = arith.constant 0 : index
      %16 = vector.load %arg5[%c0_15, %c0_16] : memref<1x32xf32, #tpu.memory_space<vmem>>, vector<1x32xf32>
      %17 = vector.broadcast %16 : vector<1x32xf32> to vector<16x32xf32>
      %18 = arith.addf %15, %17 : vector<16x32xf32>
      %cst_17 = arith.constant 0.000000e+00 : f32
      %19 = vector.broadcast %cst_17 : f32 to vector<16x32xf32>
      %20 = arith.maximumf %18, %19 : vector<16x32xf32>
      %21 = arith.truncf %20 : vector<16x32xf32> to vector<16x32xbf16>
      %c0_18 = arith.constant 0 : index
      %c0_19 = arith.constant 0 : index
      %22 = vector.load %arg6[%c0_18, %c0_19] : memref<32x32xbf16, #tpu.memory_space<vmem>>, vector<32x32xbf16>
      %cst_20 = arith.constant dense<0.000000e+00> : vector<16x32xf32>
      %23 = tpu.matmul %21, %22, %cst_20 {dimension_numbers = #tpu.dot_dimension_numbers<[1], [0], [0], [1], [0, 0, 1, 1], [], []>} : vector<16x32xbf16>, vector<32x32xbf16>, vector<16x32xf32> -> vector<16x32xf32>
      %24 = arith.truncf %23 : vector<16x32xf32> to vector<16x32xbf16>
      %c0_21 = arith.constant 0 : index
      %c0_22 = arith.constant 0 : index
      %25 = vector.load %arg7[%c0_21, %c0_22] : memref<16x32xbf16, #tpu.memory_space<vmem>>, vector<16x32xbf16>
      tpu.vector_store %arg7[%c0_21, %c0_22], %24 {strides = array<i32>} : memref<16x32xbf16, #tpu.memory_space<vmem>>, vector<16x32xbf16>,
    } else {
    }
    return
  }
  func.func @transform_0(%arg0: i32, %arg1: i32) -> (i32, i32) {
    %c0_i32 = arith.constant 0 : i32
    return %arg0, %arg1 : i32, i32
  }
  func.func @transform_1(%arg0: i32, %arg1: i32) -> (i32, i32) {
    %c0_i32 = arith.constant 0 : i32
    %c0_i32_0 = arith.constant 0 : i32
    return %arg1, %c0_i32 : i32, i32
  }
  func.func @transform_2(%arg0: i32, %arg1: i32) -> (i32, i32) {
    %c0_i32 = arith.constant 0 : i32
    %c0_i32_0 = arith.constant 0 : i32
    %c0_i32_1 = arith.constant 0 : i32
    return %c0_i32, %c0_i32_0 : i32, i32
  }
  func.func @transform_3(%arg0: i32, %arg1: i32) -> (i32, i32) {
    %c0_i32 = arith.constant 0 : i32
    %c0_i32_0 = arith.constant 0 : i32
    %c0_i32_1 = arith.constant 0 : i32
    return %c0_i32, %c0_i32_0 : i32, i32
  }
  func.func @transform_4(%arg0: i32, %arg1: i32) -> (i32, i32) {
    %c0_i32 = arith.constant 0 : i32
    %c0_i32_0 = arith.constant 0 : i32
    %c0_i32_1 = arith.constant 0 : i32
    return %c0_i32, %c0_i32_0 : i32, i32
  }
  func.func @transform_5(%arg0: i32, %arg1: i32) -> (i32, i32) {
    %c0_i32 = arith.constant 0 : i32
    %c0_i32_0 = arith.constant 0 : i32
    return %arg0, %c0_i32 : i32, i32
  }
}

</mosaic_0001>

<bundles_post_ra>
// kernel: tpu_custom_call.1
= control target key start
LH: loop header
LB: loop body
LE: loop exit
PB: predicated region body
PF: predicated region fallthrough
CT: control target
= control target key end

     0   :  { %10 = vsyncpa [#allocation4], 0  ;;  %s440_s0 = inlined_call_operand.vmem [shape: bf16[16,16], index: 0, kind: input, shape index: {}]   ;;  %s441_s1 = inlined_call_operand.vmem [shape: bf16[16,8], index: 1, kind: input, shape index: {}]   ;;  %s442_s2 = inlined_call_operand.hbm [shape: bf16[8,32], index: 2, kind: input, shape index: {}]   ;;  %s443_s3 = inlined_call_operand.vmem [shape: f32[1,32], index: 3, kind: input, shape index: {}]   ;;  %s444_s4 = inlined_call_operand.vmem [shape: bf16[32,32], index: 4, kind: input, shape index: {}]   ;;  %s445_s5 = inlined_call_operand.hbm [shape: bf16[16,32], index: 5, kind: output, shape index: {}]  }
   0x1   :  { %11 = vsyncpa [#allocation5], 0  ;;  %s360_s18 = smov [#allocation3]   ;;  %s312_s22 = scalar_lea.hbm %s442_s2, 64 }
   0x2   :  { %s22_s19 = sshll.u32 %s360_s18, 4  ;;  %p313_p0 = scmp.ne.s32.totalorder %s442_s2, %s312_s22  ;;  %s23_s19 = int_to_ptr.vmem [resolvable:$true] %s22_s19 }
   0x3   :  { %p316_p1 = scmp.lt.u32.totalorder %s312_s22, %s442_s2 }
   0x5   :  { %p318_p2 = pnand %p316_p1, %p313_p0 }
   0x7   :  { %321 = shalt.err (!%p318_p2)
}
   0x8   :  { %s322_s27 = scalar_lea.vmem %s23_s19, 64  ;;  %p327_p4 = scmp.lt.s32.totalorder %s23_s19, %s23_s19 }
   0x9   :  { %p323_p3 = scmp.ne.s32.totalorder %s23_s19, %s322_s27  ;;  %p328_p5 = scmp.lt.s32.totalorder %s322_s27, %s322_s27 }
   0xb   :  { %p329_p6 = por %p328_p5, %p327_p4 }
   0xd   :  { %p330_p7 = pnand %p329_p6, %p323_p3 }
   0xf   :  { %333 = shalt.err (!%p330_p7)
}
  0x10   :  { %25 = dma.hbm_to_vmem [thread:$0]  %s442_s2, 64, %s23_s19, [#allocation4]  }
  0x11   :  { %356 = dma.done.wait [#allocation4], 64  }
  0x12   :  { %357 = vsyncadd [#allocation4], 4294967232  ;;  %v361_v0 = vmov 0.0   ;;  %vm362_vm0 = vmmov 0   ;;  %vm53_vm1 = vcmask 1043456   ;;  %vm49_vm2 = vcmask 64512  }
  0x13   :  { %282 = vmatprep.subr.bf16.mxu0 %v361_v0  ;;  %284 = vmatprep.mubr.msk.bf16.mxu0 %vm362_vm0, %v361_v0  ;;  %v43_v1 = vld [vmem:[#allocation3] sm:$0xf]  ;;  %v308_v3 = vld [vmem:[%s441_s1] sm:$0xff]   ;;  %vm38_vm3 = vcmask 261120   ;;  %vm108_vm4 = vcmask 130048   ;;  %v311_v11 = vld [vmem:[%s444_s4 + $0x8] sm:$0xff]  }
  0x14   :  { %288 = vmatprep.subr.bf16.mxu1 %v361_v0  ;;  %290 = vmatprep.mubr.msk.bf16.mxu1 %vm362_vm0, %v361_v0  ;;  %v55_v2 = vsel %vm53_vm1, %v43_v1, 0  ;;  %39 = vst.msk [vmem:[#allocation2] sm:$0xff] %vm38_vm3, %v361_v0  ;;  %40 = vst.msk [vmem:[#allocation2 + $0x8] sm:$0xff] %vm38_vm3, %v361_v0  ;;  %v309_v9 = vld [vmem:[%s440_s0] sm:$0xff]   ;;  %vm243_vm5 = vcmask 257024  }
  0x15   :  { %283 = vmatpush3.bf16.msra.mxu0 %v55_v2  ;;  %v310_v10 = vld [vmem:[%s444_s4] sm:$0xff]   ;;  %s363_s4 = smov [#allocation6]  }
  0x16   :  { %294 = vmatprep.subr.bf16.mxu0 %v361_v0  ;;  %v267_v20 = vld [vmem:[%s443_s3] ss:$0 sm:$0xff]  ;;  %s251_s12 = sshll.u32 %s363_s4, 4  ;;  %s252_s12 = int_to_ptr.vmem [resolvable:$true] %s251_s12 }
  0x17   :  { %s334_s3 = scalar_lea.vmem %s252_s12, 128  ;;  %p339_p9 = scmp.lt.s32.totalorder %s252_s12, %s252_s12 }
  0x18   :  { %285 = vmatmul.mubr.msk.bf16.vlgmr.msra.gmra.mrb[0].mxu0 %vm49_vm2, %v308_v3  ;;  %p335_p8 = scmp.ne.s32.totalorder %s252_s12, %s334_s3  ;;  %p340_p10 = scmp.lt.s32.totalorder %s334_s3, %s334_s3 }
  0x19   :  { %298 = vmatprep.mubr.msk.bf16.mxu0 %vm362_vm0, %v361_v0  ;;  %295 = vmatpush3.bf16.msra.mxu0 %v310_v10 }
  0x1a   :  { %296 = vmatprep.subr.bf16.mxu0 %v361_v0  ;;  %p341_p11 = por %p340_p10, %p339_p9 }
  0x1b   :  { %v98_v12 = vld [vmem:[#allocation2] sm:$0xff]  ;;  %v99_v14 = vld [vmem:[#allocation2 + $0x8] sm:$0xff] }
  0x1c   :  { %p342_p12 = pnand %p341_p11, %p335_p8 }
  0x1d   :  { %297 = vmatpush3.bf16.msra.mxu0 %v311_v11 }
  0xeb   :  { %v91_v4 = vpop.f32.mrb[0].mxu0 }
  0xec   :  { %v286_v5 = vpop.f32.mrb[1].mxu0 }
  0xed   :  { %v94_v6 = vpop.f32.mrb[2].mxu0 }
  0xee   :  { %v102_v7 = vpack.c.bf16 %v94_v6, %v91_v4  ;;  %v287_v8 = vpop.f32.mrb[3].mxu0 }
  0xf0   :  { %289 = vmatpush3.bf16.msra.mxu1 %v102_v7 }
  0xf3   :  { %291 = vmatmul.mubr.msk.bf16.vlgmr.msra.gmra.mrb[0].mxu1 %vm108_vm4, %v309_v9 }
 0x1c6   :  { %v146_v13 = vpop.f32.mrb[0].mxu1 }
 0x1c7   :  { %v153_v15 = vadd.f32 %v146_v13, %v98_v12  ;;  %v292_v16 = vpop.f32.mrb[1].mxu1 }
 0x1c8   :  { %v149_v17 = vpop.f32.mrb[2].mxu1 }
 0x1c9   :  { %156 = vst.msk [vmem:[#allocation2] sm:$0xff] %vm38_vm3, %v153_v15  ;;  %v154_v18 = vadd.f32 %v149_v17, %v99_v14  ;;  %v293_v19 = vpop.f32.mrb[3].mxu1 }
 0x1cb   :  { %157 = vst.msk [vmem:[#allocation2 + $0x8] sm:$0xff] %vm38_vm3, %v154_v18 }
 0x1d0   :  { %v161_v21 = vld [vmem:[#allocation2] sm:$0xff] }
 0x1d1   :  { %v170_v22 = vadd.f32 %v267_v20, %v161_v21 }
 0x1d2   :  { %v162_v23 = vld [vmem:[#allocation2 + $0x8] sm:$0xff] }
 0x1d3   :  { %v171_v24 = vadd.f32 %v267_v20, %v162_v23  ;;  %v172_v25 = vmax.f32 %v170_v22, 0.0 }
 0x1d5   :  { %v173_v26 = vmax.f32 %v171_v24, 0.0 }
 0x1d7   :  { %v174_v27 = vpack.c.bf16 %v173_v26, %v172_v25 }
 0x1d9   :  { %299 = vmatmul.mubr.msk.bf16.vlgmr.msra.gmra.mrb[4].mxu0 %vm38_vm3, %v174_v27 }
 0x2ac   :  { %v228_v28 = vpop.f32.mrb[4].mxu0 }
 0x2ad   :  { %v273_v29 = vpack.c.bf16 %v228_v28, %v228_v28  ;;  %v300_v30 = vpop.f32.mrb[5].mxu0 }
 0x2ae   :  { %v231_v31 = vpop.f32.mrb[6].mxu0 }
 0x2af   :  { %244 = vst.msk [vmem:[#allocation6] sm:$0xf] %vm243_vm5, %v273_v29  ;;  %v274_v32 = vpack.c.bf16 %v231_v31, %v231_v31  ;;  %v301_v33 = vpop.f32.mrb[7].mxu0 }
 0x2b1   :  { %245 = vst.msk [vmem:[#allocation6 + $0x4] sm:$0xf] %vm243_vm5, %v274_v32 }
 0x2b2   :  { %345 = shalt.err (!%p342_p12)
}
 0x2b3   :  { %s346_s15 = scalar_lea.hbm %s445_s5, 128 }
 0x2b4   :  { %p347_p13 = scmp.ne.s32.totalorder %s445_s5, %s346_s15  ;;  %p350_p0 = scmp.lt.u32.totalorder %s346_s15, %s445_s5 }
 0x2b6   :  { %p352_p1 = pnand %p350_p0, %p347_p13 }
 0x2b8   :  { %355 = shalt.err (!%p352_p1)
}
 0x2b9   :  { %s364_s20 = smov 64   ;;  %s365_s21 = smov 4  }
 0x2ba   :  { %257 = dma.vmem_to_hbm [thread:$0]  %s252_s12, 128, %s445_s5, [#allocation5], %s364_s20, %s364_s20, %s365_s21  }
 0x2bb   :  { %358 = dma.done.wait [#allocation5], 128  }
 0x2bc   :  { %359 = vsyncadd [#allocation5], 4294967168 }
 0x2bd   :  { %261 = vsyncpa [#allocation4], 1 }
 0x2be   :  { %262 = vsyncpa [#allocation5], 1 }

</bundles_post_ra>
